<compile_context>
chip_gen: v5e
topology: v5e:2x2
jax: 0.10.0
libtpu: 0.0.40
codegen_flags: <defaults>
</compile_context>

<pallas_src>
import functools

import jax
import jax.numpy as jnp
from jax.experimental import pallas as pl
from jax.experimental.pallas import tpu as pltpu

CIN, COUT, K = 3, 6, 3  # Conv2d(in_channels=3, out_channels=6, kernel_size=3)
LANE = 128
SUBLANE = 8


def _conv_shift_gemm_kernel(x_ref, w_ref, o_ref, *, cin, kh, kw, w_img, p_lanes, k_pad):
    # x_ref: (cin, hw_in_pad)  -- one image, pixels on lanes, zero-padded tail.
    # w_ref: (cout_pad=8, k_pad=32) -- columns ordered (cin, kh, kw); the column
    #        right after the taps holds the bias (matched by a ones RHS row).
    # o_ref: (cout_pad=8, p_lanes)  -- full-width output pixels for this image.
    xb = x_ref[...]
    rows = []
    for c in range(cin):                       # static unroll: cin*kh*kw = 27 taps
        for i in range(kh):
            for j in range(kw):
                s = i * w_img + j              # static lane shift of tap (i, j)
                rows.append(xb[c:c + 1, s:s + p_lanes])
    rows.append(jnp.ones((1, p_lanes), jnp.float32))     # bias row
    n_rows = len(rows)                                    # cin*kh*kw + 1
    if k_pad > n_rows:
        rows.append(jnp.zeros((k_pad - n_rows, p_lanes), jnp.float32))
    rhs = jnp.concatenate(rows, axis=0)                   # (k_pad, p_lanes)
    # One fused MXU contraction: (8, 32) @ (32, p_lanes) -> (8, p_lanes).
    o_ref[...] = jnp.dot(w_ref[...], rhs, preferred_element_type=jnp.float32)


def conv2d_pallas(x, weight, bias):
    """Conv2d(stride=1, padding=0), NCHW in/out, fused pixels-on-lanes Pallas kernel."""
    n, cin, h, w = x.shape
    cout, _, kh, kw = weight.shape
    hout, wout = h - kh + 1, w - kw + 1
    hw = h * w

    p_lanes = -(-hw // LANE) * LANE                      # output pixels per image (lane aligned)
    max_shift = (kh - 1) * w + (kw - 1)
    hw_in = -(-(p_lanes + max_shift) // LANE) * LANE     # padded input lanes per image

    cout_pad = -(-cout // SUBLANE) * SUBLANE             # 6 -> 8 (Cout on sublanes)
    n_taps = cin * kh * kw                               # 27
    k_pad = -(-(n_taps + 1) // SUBLANE) * SUBLANE        # taps + bias row -> 32

    # Layout glue (cheap, transpose-free): NCHW -> (N, Cin, H*W) + zero-pad the
    # lane tail so every shifted tap read stays in bounds (even for the cropped
    # garbage pixels near the end of the image).
    x_slab = jnp.pad(x.reshape(n, cin, hw), ((0, 0), (0, 0), (0, hw_in - hw)))

    # Weight matrix (8, 32): columns in (cin, kh, kw) order, bias as an extra
    # column matched by the kernel's ones-row, zero-padded to the MXU tile.
    w_aug = jnp.concatenate([weight.reshape(cout, n_taps), bias[:, None]], axis=1)
    w_aug = jnp.pad(w_aug, ((0, cout_pad - cout), (0, k_pad - (n_taps + 1))))

    kernel = functools.partial(
        _conv_shift_gemm_kernel,
        cin=cin, kh=kh, kw=kw, w_img=w, p_lanes=p_lanes, k_pad=k_pad)

    flops = 2 * n * hout * wout * cout * n_taps
    bytes_accessed = 4 * (x_slab.size + w_aug.size + n * cout_pad * p_lanes)

    out = pl.pallas_call(
        kernel,
        out_shape=jax.ShapeDtypeStruct((n, cout_pad, p_lanes), jnp.float32),
        grid=(n,),
        in_specs=[
            pl.BlockSpec((None, cin, hw_in), lambda i: (i, 0, 0)),   # one image per step
            pl.BlockSpec((cout_pad, k_pad), lambda i: (0, 0)),       # tiny resident weights
        ],
        out_specs=pl.BlockSpec((None, cout_pad, p_lanes), lambda i: (i, 0, 0)),
        compiler_params=pltpu.CompilerParams(
            dimension_semantics=("parallel",)),
        cost_estimate=pl.CostEstimate(
            flops=flops, transcendentals=0, bytes_accessed=bytes_accessed),
    )(x_slab, w_aug)

    # Crop: drop padded Cout sublanes / pixel lanes, un-flatten, keep the valid
    # (Hout, Wout) window.  Result is already NCHW -- no transpose needed.
    y = out[:, :cout, :hw].reshape(n, cout, h, w)[:, :, :hout, :wout]
    return y


def init_params(key):
    # Deterministic init mirroring PyTorch Conv2d default (uniform, bound=1/sqrt(fan_in)).
    fan_in = CIN * K * K
    bound = 1.0 / (fan_in ** 0.5)
    kw_, kb_ = jax.random.split(key)
    weight = jax.random.uniform(kw_, (COUT, CIN, K, K), jnp.float32, -bound, bound)
    bias = jax.random.uniform(kb_, (COUT,), jnp.float32, -bound, bound)
    return weight, bias


if __name__ == "__main__":
    key = jax.random.PRNGKey(0)
    kx, kp = jax.random.split(key)
    x = jax.random.normal(kx, (2, CIN, 16, 16), dtype=jnp.float32)  # NCHW
    weight, bias = init_params(kp)

    conv = jax.jit(conv2d_pallas)
    y = jax.block_until_ready(conv(x, weight, bias))

    # Sanity check against XLA's native convolution (same NCHW semantics).
    y_ref = jax.lax.conv_general_dilated(
        x, weight, window_strides=(1, 1), padding="VALID",
        dimension_numbers=("NCHW", "OIHW", "NCHW"),
    ) + bias[None, :, None, None]
    assert y.shape == (2, COUT, 14, 14), y.shape
    assert jnp.allclose(y, y_ref, atol=1e-5, rtol=1e-5)

    print("KERNEL_OK")
</pallas_src>

<mosaic_0001>
module attributes {stable_mosaic.version = 11 : i64} {
  func.func @_conv_shift_gemm_kernel(%arg0: i32, %arg1: memref<1x3x384xf32, #tpu.memory_space<vmem>>, %arg2: memref<8x32xf32, #tpu.memory_space<vmem>>, %arg3: memref<1x8x256xf32, #tpu.memory_space<vmem>>) attributes {dimension_semantics = [#tpu.dimension_semantics<parallel>], iteration_bounds = array<i64: 2>, scalar_prefetch = 0 : i64, scratch_operands = 0 : i64, tpu.core_type = #tpu.core_type<tc>, window_params = [{transform_indices = @transform_0, window_bounds = array<i64: 1, 3, 384>}, {pipeline_mode = #tpu.pipeline_mode<synchronous>, transform_indices = @transform_1, window_bounds = array<i64: 8, 32>}, {transform_indices = @transform_2, window_bounds = array<i64: 1, 8, 256>}]} {
    %c0 = arith.constant 0 : index
    %c0_0 = arith.constant 0 : index
    %c0_1 = arith.constant 0 : index
    %0 = vector.load %arg1[%c0, %c0_0, %c0_1] : memref<1x3x384xf32, #tpu.memory_space<vmem>>, vector<1x3x384xf32>
    %1 = vector.shape_cast %0 : vector<1x3x384xf32> to vector<3x384xf32>
    %2 = vector.extract_strided_slice %1 {offsets = [0, 0], sizes = [1, 256], strides = [1, 1]} : vector<3x384xf32> to vector<1x256xf32>
    %3 = vector.extract_strided_slice %1 {offsets = [0, 1], sizes = [1, 256], strides = [1, 1]} : vector<3x384xf32> to vector<1x256xf32>
    %4 = vector.extract_strided_slice %1 {offsets = [0, 2], sizes = [1, 256], strides = [1, 1]} : vector<3x384xf32> to vector<1x256xf32>
    %5 = vector.extract_strided_slice %1 {offsets = [0, 16], sizes = [1, 256], strides = [1, 1]} : vector<3x384xf32> to vector<1x256xf32>
    %6 = vector.extract_strided_slice %1 {offsets = [0, 17], sizes = [1, 256], strides = [1, 1]} : vector<3x384xf32> to vector<1x256xf32>
    %7 = vector.extract_strided_slice %1 {offsets = [0, 18], sizes = [1, 256], strides = [1, 1]} : vector<3x384xf32> to vector<1x256xf32>
    %8 = vector.extract_strided_slice %1 {offsets = [0, 32], sizes = [1, 256], strides = [1, 1]} : vector<3x384xf32> to vector<1x256xf32>
    %9 = vector.extract_strided_slice %1 {offsets = [0, 33], sizes = [1, 256], strides = [1, 1]} : vector<3x384xf32> to vector<1x256xf32>
    %10 = vector.extract_strided_slice %1 {offsets = [0, 34], sizes = [1, 256], strides = [1, 1]} : vector<3x384xf32> to vector<1x256xf32>
    %11 = vector.extract_strided_slice %1 {offsets = [1, 0], sizes = [1, 256], strides = [1, 1]} : vector<3x384xf32> to vector<1x256xf32>
    %12 = vector.extract_strided_slice %1 {offsets = [1, 1], sizes = [1, 256], strides = [1, 1]} : vector<3x384xf32> to vector<1x256xf32>
    %13 = vector.extract_strided_slice %1 {offsets = [1, 2], sizes = [1, 256], strides = [1, 1]} : vector<3x384xf32> to vector<1x256xf32>
    %14 = vector.extract_strided_slice %1 {offsets = [1, 16], sizes = [1, 256], strides = [1, 1]} : vector<3x384xf32> to vector<1x256xf32>
    %15 = vector.extract_strided_slice %1 {offsets = [1, 17], sizes = [1, 256], strides = [1, 1]} : vector<3x384xf32> to vector<1x256xf32>
    %16 = vector.extract_strided_slice %1 {offsets = [1, 18], sizes = [1, 256], strides = [1, 1]} : vector<3x384xf32> to vector<1x256xf32>
    %17 = vector.extract_strided_slice %1 {offsets = [1, 32], sizes = [1, 256], strides = [1, 1]} : vector<3x384xf32> to vector<1x256xf32>
    %18 = vector.extract_strided_slice %1 {offsets = [1, 33], sizes = [1, 256], strides = [1, 1]} : vector<3x384xf32> to vector<1x256xf32>
    %19 = vector.extract_strided_slice %1 {offsets = [1, 34], sizes = [1, 256], strides = [1, 1]} : vector<3x384xf32> to vector<1x256xf32>
    %20 = vector.extract_strided_slice %1 {offsets = [2, 0], sizes = [1, 256], strides = [1, 1]} : vector<3x384xf32> to vector<1x256xf32>
    %21 = vector.extract_strided_slice %1 {offsets = [2, 1], sizes = [1, 256], strides = [1, 1]} : vector<3x384xf32> to vector<1x256xf32>
    %22 = vector.extract_strided_slice %1 {offsets = [2, 2], sizes = [1, 256], strides = [1, 1]} : vector<3x384xf32> to vector<1x256xf32>
    %23 = vector.extract_strided_slice %1 {offsets = [2, 16], sizes = [1, 256], strides = [1, 1]} : vector<3x384xf32> to vector<1x256xf32>
    %24 = vector.extract_strided_slice %1 {offsets = [2, 17], sizes = [1, 256], strides = [1, 1]} : vector<3x384xf32> to vector<1x256xf32>
    %25 = vector.extract_strided_slice %1 {offsets = [2, 18], sizes = [1, 256], strides = [1, 1]} : vector<3x384xf32> to vector<1x256xf32>
    %26 = vector.extract_strided_slice %1 {offsets = [2, 32], sizes = [1, 256], strides = [1, 1]} : vector<3x384xf32> to vector<1x256xf32>
    %27 = vector.extract_strided_slice %1 {offsets = [2, 33], sizes = [1, 256], strides = [1, 1]} : vector<3x384xf32> to vector<1x256xf32>
    %28 = vector.extract_strided_slice %1 {offsets = [2, 34], sizes = [1, 256], strides = [1, 1]} : vector<3x384xf32> to vector<1x256xf32>
    %cst = arith.constant 1.000000e+00 : f32
    %29 = vector.broadcast %cst : f32 to vector<1x256xf32>
    %cst_2 = arith.constant 0.000000e+00 : f32
    %30 = vector.broadcast %cst_2 : f32 to vector<4x256xf32>
    %31 = tpu.concatenate %2, %3, %4, %5, %6, %7, %8, %9, %10, %11, %12, %13, %14, %15, %16, %17 in 0 : vector<1x256xf32>, vector<1x256xf32>, vector<1x256xf32>, vector<1x256xf32>, vector<1x256xf32>, vector<1x256xf32>, vector<1x256xf32>, vector<1x256xf32>, vector<1x256xf32>, vector<1x256xf32>, vector<1x256xf32>, vector<1x256xf32>, vector<1x256xf32>, vector<1x256xf32>, vector<1x256xf32>, vector<1x256xf32> -> vector<16x256xf32>
    %32 = tpu.concatenate %18, %19, %20, %21, %22, %23, %24, %25, %26, %27, %28, %29, %30 in 0 : vector<1x256xf32>, vector<1x256xf32>, vector<1x256xf32>, vector<1x256xf32>, vector<1x256xf32>, vector<1x256xf32>, vector<1x256xf32>, vector<1x256xf32>, vector<1x256xf32>, vector<1x256xf32>, vector<1x256xf32>, vector<1x256xf32>, vector<4x256xf32> -> vector<16x256xf32>
    %33 = tpu.concatenate %31, %32 in 0 : vector<16x256xf32>, vector<16x256xf32> -> vector<32x256xf32>
    %c0_3 = arith.constant 0 : index
    %c0_4 = arith.constant 0 : index
    %34 = vector.load %arg2[%c0_3, %c0_4] : memref<8x32xf32, #tpu.memory_space<vmem>>, vector<8x32xf32>
    %cst_5 = arith.constant dense<0.000000e+00> : vector<8x256xf32>
    %35 = tpu.matmul %34, %33, %cst_5 {dimension_numbers = #tpu.dot_dimension_numbers<[1], [0], [0], [1], [0, 0, 1, 1], [], []>} : vector<8x32xf32>, vector<32x256xf32>, vector<8x256xf32> -> vector<8x256xf32>
    %c0_6 = arith.constant 0 : index
    %c0_7 = arith.constant 0 : index
    %c0_8 = arith.constant 0 : index
    %36 = vector.load %arg3[%c0_6, %c0_7, %c0_8] : memref<1x8x256xf32, #tpu.memory_space<vmem>>, vector<1x8x256xf32>
    %37 = vector.shape_cast %36 : vector<1x8x256xf32> to vector<8x256xf32>
    %38 = vector.shape_cast %35 : vector<8x256xf32> to vector<1x8x256xf32>
    tpu.vector_store %arg3[%c0_6, %c0_7, %c0_8], %38 {strides = array<i32>} : memref<1x8x256xf32, #tpu.memory_space<vmem>>, vector<1x8x256xf32>,
    return
  }
  func.func @transform_0(%arg0: i32) -> (i32, i32, i32) {
    %c0_i32 = arith.constant 0 : i32
    %c0_i32_0 = arith.constant 0 : i32
    %c0_i32_1 = arith.constant 0 : i32
    return %arg0, %c0_i32, %c0_i32_0 : i32, i32, i32
  }
  func.func @transform_1(%arg0: i32) -> (i32, i32) {
    %c0_i32 = arith.constant 0 : i32
    %c0_i32_0 = arith.constant 0 : i32
    %c0_i32_1 = arith.constant 0 : i32
    return %c0_i32, %c0_i32_0 : i32, i32
  }
  func.func @transform_2(%arg0: i32) -> (i32, i32, i32) {
    %c0_i32 = arith.constant 0 : i32
    %c0_i32_0 = arith.constant 0 : i32
    %c0_i32_1 = arith.constant 0 : i32
    return %arg0, %c0_i32, %c0_i32_0 : i32, i32, i32
  }
}

</mosaic_0001>

<bundles_post_ra>
// kernel: conv2d_pallas.1
= control target key start
LH: loop header
LB: loop body
LE: loop exit
PB: predicated region body
PF: predicated region fallthrough
CT: control target
= control target key end

     0   :  { %s831_s9 = smov 0   ;;  %s1075_s0 = inlined_call_operand.vmem [shape: f32[2,3,384], index: 0, kind: input, shape index: {}]   ;;  %s1076_s1 = inlined_call_operand.vmem [shape: f32[8,32], index: 1, kind: input, shape index: {}]   ;;  %s1077_s2 = inlined_call_operand.vmem [shape: f32[2,8,256], index: 2, kind: output, shape index: {}]  }
   0x1 LB: > { %s601_s10 = sadd.s32 4294967295, %s799_s9   ;;  %p605_p0 = scmp.ge.s32.totalorder %s799_s9, 1  ;;  %s799_s9 = sphi %s831_s9, %s12_s9  }
   0x2   : > { %p112_p1 = scmp.lt.s32.totalorder %s799_s9, 3 }
   0x4   : > { %p113_p2 = pnand %p605_p0, %p112_p1 }
   0x5   : > { %p134_p3 = scmp.lt.s32.totalorder (!%p113_p2), %s601_s10, 1  ;;  %s801_s15 = smov (!%p113_p2), 1  }
   0x6   : > { %116 = sbr.rel (%p113_p2) target bundleno = 432 (0x1b0), region = 28  ;;  %s802_s16 = smov (!%p113_p2), 33  }
   0x7   : > { %s803_s17 = smov (!%p113_p2), 127   ;;  %s804_s18 = smov (!%p113_p2), 32  }
   0x8   : > { %s805_s19 = smov (!%p113_p2), 31   ;;  %s806_s20 = smov (!%p113_p2), 17  }
   0x9   : > { %s807_s21 = smov (!%p113_p2), 15   ;;  %s808_s22 = smov (!%p113_p2), 16  }
   0xa   : > { %s809_s23 = smov (!%p113_p2), 94   ;;  %s810_s24 = smov (!%p113_p2), 126  }
   0xb   : > { %s1079_s10 = smov (!%p134_p3, %s601_s10), 1  ;;  %s811_s25 = smov 112   ;;  %vm421_vm0 = vcmask 7168   ;;  %vm159_vm1 = vcmask 1039360   ;;  %vm306_vm2 = vcmask 1040384   ;;  %vm309_vm3 = vcmask 1041408  }
   0xc   : > { %s614_s11 = smul.u32 12, %s1079_s10  ;;  %s812_s26 = smov 111   ;;  %vm312_vm4 = vcmask 1042432   ;;  %vm315_vm5 = vcmask 1043456   ;;  %vm361_vm6 = vcmask 261120   ;;  %vm349_vm7 = vcmask 269312  }
   0xd   : > { %s813_s27 = smov 110   ;;  %s814_s28 = smov 96   ;;  %vm373_vm8 = vcmask 252928   ;;  %vm318_vm9 = vcmask 1044480   ;;  %vm385_vm10 = vcmask 138240   ;;  %vm321_vm11 = vcmask 1045504  }
   0xe   : > { %s138_s14 = scalar_lea.vmem %s1075_s0, %s614_s11  ;;  %s815_s29 = smov 95   ;;  %vm397_vm12 = vcmask 130048   ;;  %vm324_vm13 = vcmask 1046528   ;;  %vm409_vm14 = vcmask 121856   ;;  %vm236_vm15 = vcmask 769024  }
   0xf   : > { %v144_v0 = vld [vmem:[%s138_s14] sm:$0x77]  ;;  %v145_v5 = vld [vmem:[%s138_s14 + $0x8] sm:$0x7]  ;;  %s613_s4 = sshll.u32 %s1079_s10, 4 }
  0x10   : > { %v845_v1 = vperm.slane %v144_v0, 2  ;;  %v847_v2 = vperm.slane %v144_v0, 6  ;;  %v849_v3 = vperm.slane %v144_v0, 1  ;;  %v851_v4 = vperm.slane %v144_v0, 5  ;;  %s143_s7 = scalar_lea.vmem %s1077_s2, %s613_s4 }
  0x11   : > { %v853_v6 = vperm.slane %v145_v5, 2  ;;  %v861_v9 = vperm.slane %v145_v5, 1  ;;  %v873_v12 = vperm.slane %v144_v0, 0  ;;  %v875_v13 = vperm.slane %v144_v0, 4 }
  0x12   : > { %v648_v7 = vpack.i.bf16 %v847_v2, %v845_v1  ;;  %v638_v8 = vpack.i.bf16 %v851_v4, %v849_v3  ;;  %v881_v15 = vperm.slane %v145_v5, 0 }
  0x13   : > { %419 = vrot.lane.b32.xlu2 %v853_v6, %s801_s15  ;;  %v643_v10 = vpack.i.bf16 %v845_v1, %v861_v9  ;;  %v663_v11 = vpack.i.bf16 %v853_v6, %v847_v2  ;;  %v879_v14 = vpack.i.bf16 %v875_v13, %v873_v12  ;;  %v703_v16 = vpack.i.bf16 %v873_v12, %v861_v9 }
  0x14   : > { %649 = vrot.lane.b32.xlu1 %v648_v7, %s802_s16  ;;  %639 = vrot.lane.b32.xlu0 %v638_v8, %s803_s17  ;;  %v894_v17 = vpack.i.bf16 %v881_v15, %v875_v13 }
  0x1b   : > { %659 = vrot.lane.b32.xlu2 %v648_v7, %s804_s18 }
  0x1c   : > { %654 = vrot.lane.b32.xlu1 %v648_v7, %s801_s15  ;;  %644 = vrot.lane.b32.xlu0 %v643_v10, %s803_s17 }
  0x23   : > { %669 = vrot.lane.b32.xlu2 %v648_v7, %s805_s19 }
  0x24   : > { %664 = vrot.lane.b32.xlu1 %v663_v11, %s803_s17  ;;  %359 = vrot.lane.b32.xlu0 %v853_v6, %s804_s18 }
  0x2b   : > { %383 = vrot.lane.b32.xlu2 %v853_v6, %s806_s20 }
  0x2c   : > { %674 = vrot.lane.b32.xlu1 %v648_v7, %s806_s20  ;;  %371 = vrot.lane.b32.xlu0 %v853_v6, %s805_s19 }
  0x33   : > { %684 = vrot.lane.b32.xlu2 %v648_v7, %s807_s21 }
  0x34   : > { %395 = vrot.lane.b32.xlu1 %v853_v6, %s808_s22  ;;  %679 = vrot.lane.b32.xlu0 %v648_v7, %s808_s22 }
  0x3b   : > { %234 = vrot.lane.b32.xlu2 %v881_v15, %s809_s23 }
  0x3c   : > { %407 = vrot.lane.b32.xlu0 %v853_v6, %s807_s21  ;;  %689 = vrot.lane.b32.xlu1 %v879_v14, %s809_s23 }
  0x43   : > { %699 = vrot.lane.b32.xlu2 %v638_v8, %s810_s24 }
  0x44   : > { %694 = vrot.lane.b32.xlu0 %v879_v14, %s803_s17  ;;  %157 = vrot.lane.b32.xlu1 %v881_v15, %s803_s17 }
  0x4b   : > { %714 = vrot.lane.b32.xlu2 %v638_v8, %s811_s25 }
  0x4c   : > { %704 = vrot.lane.b32.xlu0 %v703_v16, %s810_s24  ;;  %709 = vrot.lane.b32.xlu1 %v894_v17, %s810_s24 }
  0x53   : > { %734 = vrot.lane.b32.xlu2 %v703_v16, %s812_s26 }
  0x54   : > { %719 = vrot.lane.b32.xlu0 %v703_v16, %s811_s25  ;;  %729 = vrot.lane.b32.xlu1 %v638_v8, %s812_s26 }
  0x5b   : > { %749 = vrot.lane.b32.xlu2 %v703_v16, %s813_s27 }
  0x5c   : > { %724 = vrot.lane.b32.xlu0 %v894_v17, %s811_s25  ;;  %744 = vrot.lane.b32.xlu1 %v638_v8, %s813_s27 }
  0x63   : > { %759 = vrot.lane.b32.xlu2 %v638_v8, %s814_s28 }
  0x64   : > { %739 = vrot.lane.b32.xlu0 %v894_v17, %s812_s26  ;;  %754 = vrot.lane.b32.xlu1 %v894_v17, %s813_s27 }
  0x6c   : > { %764 = vrot.lane.b32.xlu0 %v703_v16, %s814_s28 }
  0x6d   : > { %v420_v18 = vpop.permute.xlu2 %419 }
  0x75   : > { %v902_v19 = vpop.permute.xlu2 %659 }
  0x76   : > { %v662_v52 = vunpack.i.h.bf16 %v902_v19  ;;  %v661_v55 = vunpack.i.l.bf16 %v902_v19 }
  0x78   : > { %v362_v63 = vsel %vm361_vm6, %v661_v55, %v662_v52 }
  0x7d   : > { %v906_v22 = vpop.permute.xlu2 %669 }
  0x7e   : > { %v672_v58 = vunpack.i.h.bf16 %v906_v22  ;;  %v671_v61 = vunpack.i.l.bf16 %v906_v22 }
  0x80   : > { %v374_v8 = vsel %vm373_vm8, %v671_v61, %v672_v58 }
  0x85   : > { %v910_v27 = vpop.permute.xlu2 %383 }
  0x86   : > { %v904_v20 = vpop.permute.xlu1 %649  ;;  %v640_v21 = vpop.permute.xlu0 %639 }
  0x87   : > { %v642_v29 = vunpack.i.h.bf16 %v640_v21  ;;  %v641_v30 = vunpack.i.l.bf16 %v640_v21  ;;  %v651_v46 = vunpack.i.l.bf16 %v904_v20  ;;  %v652_v57 = vunpack.i.h.bf16 %v904_v20 }
  0x89   : > { %v921_v40 = vsel %vm159_vm1, %v641_v30, %v642_v29 }
  0x8a   : > { %v441_v49 = vsel %vm306_vm2, %v849_v3, %v921_v40 }
  0x8b   : > { %v444_v59 = vsel %vm309_vm3, %v441_v49, %v651_v46 }
  0x8c   : > { %v447_v0 = vsel %vm312_vm4, %v444_v59, %v661_v55 }
  0x8d   : > { %v934_v50 = vpop.permute.xlu2 %684  ;;  %v450_v16 = vsel %vm315_vm5, %v447_v0, %v671_v61 }
  0x8e   : > { %v655_v23 = vpop.permute.xlu1 %654  ;;  %v908_v24 = vpop.permute.xlu0 %644  ;;  %v686_v19 = vunpack.i.l.bf16 %v934_v50  ;;  %v687_v30 = vunpack.i.h.bf16 %v934_v50 }
  0x8f   : > { %v656_v25 = vunpack.i.l.bf16 %v655_v23  ;;  %v657_v26 = vunpack.i.h.bf16 %v655_v23  ;;  %v647_v31 = vunpack.i.h.bf16 %v908_v24  ;;  %v646_v43 = vunpack.i.l.bf16 %v908_v24 }
  0x91   : > { %v422_v28 = vsel %vm421_vm0, %v656_v25, %v657_v26  ;;  %v462_v34 = vsel %vm306_vm2, %v656_v25, %v845_v1  ;;  %v939_v56 = vsel %vm159_vm1, %v642_v29, %v646_v43  ;;  %v423_v60 = vsel %vm421_vm0, %v657_v26, %v420_v18 }
  0x92   : > { %v463_v35 = vsel %vm306_vm2, %v422_v28, %v847_v2  ;;  %v442_v62 = vsel %vm306_vm2, %v851_v4, %v939_v56  ;;  %v464_v1 = vsel %vm306_vm2, %v423_v60, %v853_v6  ;;  %v350_v2 = vsel %vm349_vm7, %v651_v46, %v652_v57 }
  0x93   : > { %v445_v10 = vsel %vm309_vm3, %v442_v62, %v350_v2  ;;  %v443_v18 = vsel %vm306_vm2, %v861_v9, %v646_v43  ;;  %v410_v43 = vsel %vm409_vm14, %v686_v19, %v687_v30  ;;  %vm170_vm0 = vcmask 1031168  }
  0x94   : > { %v448_v9 = vsel %vm312_vm4, %v445_v10, %v362_v63  ;;  %v446_v29 = vsel %vm309_vm3, %v443_v18, %v652_v57  ;;  %vm181_vm7 = vcmask 916480  }
  0x95   : > { %v235_v28 = vpop.permute.xlu2 %234 }
  0x96   : > { %v665_v32 = vpop.permute.xlu1 %664  ;;  %v360_v33 = vpop.permute.xlu0 %359 }
  0x97   : > { %v667_v36 = vunpack.i.h.bf16 %v665_v32  ;;  %v666_v37 = vunpack.i.l.bf16 %v665_v32  ;;  %v363_v21 = vsel %vm361_vm6, %v662_v52, %v360_v33 }
  0x99   : > { %v436_v38 = vsel %vm159_vm1, %v647_v31, %v666_v37  ;;  %v437_v39 = vsel %vm159_vm1, %v666_v37, %v667_v36  ;;  %v467_v5 = vsel %vm309_vm3, %v464_v1, %v667_v36  ;;  %v451_v37 = vsel %vm315_vm5, %v448_v9, %v374_v8 }
  0x9a   : > { %v465_v41 = vsel %vm309_vm3, %v462_v34, %v436_v38  ;;  %v466_v42 = vsel %vm309_vm3, %v463_v35, %v437_v39  ;;  %v470_v24 = vsel %vm312_vm4, %v467_v5, 1.0 }
  0x9b   : > { %v468_v44 = vsel %vm312_vm4, %v465_v41, 1.0  ;;  %v469_v45 = vsel %vm312_vm4, %v466_v42, 1.0  ;;  %v473_v35 = vsel %vm315_vm5, %v470_v24, 0.0 }
  0x9c   : > { %v471_v47 = vsel %vm315_vm5, %v468_v44, 0.0  ;;  %v472_v48 = vsel %vm315_vm5, %v469_v45, 0.0 }
  0x9d   : > { %v768_v51 = vpack.i.bf16 %v472_v48, %v471_v47  ;;  %v700_v57 = vpop.permute.xlu2 %699 }
  0x9e   : > { %v675_v53 = vpop.permute.xlu1 %674  ;;  %v372_v54 = vpop.permute.xlu0 %371  ;;  %v702_v5 = vunpack.i.h.bf16 %v700_v57 }
  0x9f   : > { %769 = vrot.lane.b32.xlu1 %v768_v51, %s815_s29  ;;  %v676_v7 = vunpack.i.l.bf16 %v675_v53  ;;  %v677_v11 = vunpack.i.h.bf16 %v675_v53  ;;  %v375_v26 = vsel %vm373_vm8, %v672_v58, %v372_v54 }
  0xa1   : > { %v453_v25 = vsel %vm318_vm9, %v450_v16, %v676_v7  ;;  %v386_v31 = vsel %vm385_vm10, %v676_v7, %v677_v11  ;;  %v387_v36 = vsel %vm385_vm10, %v677_v11, %v910_v27 }
  0xa2   : > { %v454_v42 = vsel %vm318_vm9, %v451_v37, %v386_v31 }
  0xa6   : > { %v396_v6 = vpop.permute.xlu1 %395  ;;  %v680_v20 = vpop.permute.xlu0 %679 }
  0xa7   : > { %v682_v22 = vunpack.i.h.bf16 %v680_v20  ;;  %v681_v23 = vunpack.i.l.bf16 %v680_v20  ;;  %784 = vrot.lane.b32.xlu1 %v894_v17, %s814_s28  ;;  %v449_v17 = vsel %vm312_vm4, %v446_v29, %v363_v21 }
  0xa8   : > { %v452_v38 = vsel %vm315_vm5, %v449_v17, %v375_v26 }
  0xa9   : > { %v456_v32 = vsel %vm321_vm11, %v453_v25, %v681_v23  ;;  %v398_v33 = vsel %vm397_vm12, %v681_v23, %v682_v22  ;;  %v399_v41 = vsel %vm397_vm12, %v682_v22, %v396_v6  ;;  %v455_v45 = vsel %vm318_vm9, %v452_v38, %v387_v36 }
  0xaa   : > { %v459_v34 = vsel %vm324_vm13, %v456_v32, %v686_v19  ;;  %v457_v44 = vsel %vm321_vm11, %v454_v42, %v398_v33  ;;  %v458_v48 = vsel %vm321_vm11, %v455_v45, %v399_v41 }
  0xab   : > { %v773_v39 = vpack.i.bf16 %v459_v34, %v473_v35  ;;  %v460_v52 = vsel %vm324_vm13, %v457_v44, %v410_v43 }
  0xad   : > { %774 = vrot.lane.b32.xlu2 %v773_v39, %s815_s29 }
  0xae   : > { %v408_v46 = vpop.permute.xlu0 %407  ;;  %v690_v27 = vpop.permute.xlu1 %689 }
  0xaf   : > { %v411_v47 = vsel %vm409_vm14, %v687_v30, %v408_v46  ;;  %v692_v49 = vunpack.i.h.bf16 %v690_v27  ;;  %v691_v50 = vunpack.i.l.bf16 %v690_v27 }
  0xb0   : > { %v461_v51 = vsel %vm324_vm13, %v458_v48, %v411_v47 }
  0xb1   : > { %v238_v53 = vsel %vm236_vm15, %v692_v49, %v235_v28  ;;  %v237_v54 = vsel %vm236_vm15, %v691_v50, %v692_v49  ;;  %v778_v55 = vpack.i.bf16 %v461_v51, %v460_v52 }
  0xb2   : > { %v328_v58 = vsel %vm306_vm2, %v238_v53, %v851_v4  ;;  %v327_v59 = vsel %vm306_vm2, %v237_v54, %v849_v3 }
  0xb3   : > { %v329_v60 = vsel %vm309_vm3, %v327_v59, %v921_v40  ;;  %779 = vrot.lane.b32.xlu0 %v778_v55, %s815_s29  ;;  %v330_v61 = vsel %vm309_vm3, %v328_v58, %v939_v56  ;;  %v715_v56 = vpop.permute.xlu2 %714 }
  0xb4   : > { %v717_v18 = vunpack.i.h.bf16 %v715_v56  ;;  %v716_v19 = vunpack.i.l.bf16 %v715_v56 }
  0xb5   : > { %789 = vrot.lane.b32.xlu2 %v879_v14, %s815_s29  ;;  %v701_v14 = vunpack.i.l.bf16 %v700_v57 }
  0xb6   : > { %v695_v62 = vpop.permute.xlu0 %694  ;;  %v158_v63 = vpop.permute.xlu1 %157  ;;  %v272_v23 = vsel %vm181_vm7, %v716_v19, %v717_v18 }
  0xb7   : > { %v697_v0 = vunpack.i.h.bf16 %v695_v62  ;;  %v696_v1 = vunpack.i.l.bf16 %v695_v62 }
  0xb9   : > { %v160_v4 = vsel %vm159_vm1, %v696_v1, %v697_v0  ;;  %v161_v2 = vsel %vm159_vm1, %v697_v0, %v158_v63  ;;  %vm192_vm1 = vcmask 908288  }
  0xba   : > { %v307_v3 = vsel %vm306_vm2, %v873_v12, %v160_v4  ;;  %v308_v40 = vsel %vm306_vm2, %v875_v13, %v161_v2  ;;  %v262_v13 = vsel %vm170_vm0, %v701_v14, %v702_v5  ;;  %vm203_vm2 = vcmask 900096  }
  0xbb   : > { %223 = vrot.lane.b32.xlu0 %v881_v15, %s815_s29  ;;  %v735_v22 = vpop.permute.xlu2 %734  ;;  %v331_v25 = vsel %vm312_vm4, %v329_v60, %v262_v13 }
  0xbc   : > { %v736_v24 = vunpack.i.l.bf16 %v735_v22  ;;  %v333_v32 = vsel %vm315_vm5, %v331_v25, %v272_v23  ;;  %v737_v45 = vunpack.i.h.bf16 %v735_v22 }
  0xbe   : > { %v705_v7 = vpop.permute.xlu0 %704  ;;  %v710_v8 = vpop.permute.xlu1 %709 }
  0xbf   : > { %v707_v10 = vunpack.i.h.bf16 %v705_v7  ;;  %v712_v11 = vunpack.i.h.bf16 %v710_v8  ;;  %v711_v16 = vunpack.i.l.bf16 %v710_v8  ;;  %v706_v20 = vunpack.i.l.bf16 %v705_v7 }
  0xc1   : > { %v171_v12 = vsel %vm170_vm0, %v707_v10, %v711_v16  ;;  %v172_v6 = vsel %vm170_vm0, %v711_v16, %v712_v11  ;;  %v263_v26 = vsel %vm170_vm0, %v702_v5, %v706_v20 }
  0xc2   : > { %v310_v15 = vsel %vm309_vm3, %v307_v3, %v171_v12  ;;  %v311_v21 = vsel %vm309_vm3, %v308_v40, %v172_v6  ;;  %v332_v17 = vsel %vm312_vm4, %v330_v61, %v263_v26  ;;  %vm225_vm3 = vcmask 777216  }
  0xc3   : > { %v750_v48 = vpop.permute.xlu2 %749 }
  0xc4   : > { %v752_v51 = vunpack.i.h.bf16 %v750_v48 }
  0xc6   : > { %v720_v9 = vpop.permute.xlu0 %719  ;;  %v730_v28 = vpop.permute.xlu1 %729 }
  0xc7   : > { %v721_v29 = vunpack.i.l.bf16 %v720_v9  ;;  %v732_v30 = vunpack.i.h.bf16 %v730_v28  ;;  %v731_v31 = vunpack.i.l.bf16 %v730_v28  ;;  %v722_v42 = vunpack.i.h.bf16 %v720_v9 }
  0xc9   : > { %v273_v33 = vsel %vm181_vm7, %v717_v18, %v721_v29  ;;  %v283_v34 = vsel %vm192_vm1, %v732_v30, %v736_v24  ;;  %v282_v35 = vsel %vm192_vm1, %v731_v31, %v732_v30  ;;  %v751_v18 = vunpack.i.l.bf16 %v750_v48 }
  0xca   : > { %v1023_v36 = vsel %vm318_vm9, %v333_v32, %v282_v35  ;;  %v334_v37 = vsel %vm315_vm5, %v332_v17, %v273_v33 }
  0xcb   : > { %v1027_v38 = vsel %vm318_vm9, %v334_v37, %v283_v34  ;;  %v760_v4 = vpop.permute.xlu2 %759 }
  0xcc   : > { %v762_v13 = vunpack.i.h.bf16 %v760_v4  ;;  %v761_v20 = vunpack.i.l.bf16 %v760_v4 }
  0xce   : > { %v725_v39 = vpop.permute.xlu0 %724  ;;  %v745_v41 = vpop.permute.xlu1 %744 }
  0xcf   : > { %v727_v43 = vunpack.i.h.bf16 %v725_v39  ;;  %v726_v44 = vunpack.i.l.bf16 %v725_v39  ;;  %v747_v11 = vunpack.i.h.bf16 %v745_v41  ;;  %v746_v16 = vunpack.i.l.bf16 %v745_v41 }
  0xd1   : > { %v182_v46 = vsel %vm181_vm7, %v722_v42, %v726_v44  ;;  %v183_v27 = vsel %vm181_vm7, %v726_v44, %v727_v43  ;;  %v293_v25 = vsel %vm203_vm2, %v747_v11, %v751_v18  ;;  %v500_v43 = vld [vmem:[%s1076_s1] sm:$0xff] }
  0xd2   : > { %v313_v52 = vsel %vm312_vm4, %v310_v15, %v182_v46  ;;  %v314_v53 = vsel %vm312_vm4, %v311_v21, %v183_v27  ;;  %vm214_vm4 = vcmask 785408   ;;  %v292_v21 = vsel %vm203_vm2, %v746_v16, %v747_v11 }
  0xd3   : > { %v302_v31 = vsel %vm214_vm4, %v761_v20, %v762_v13  ;;  %v337_v32 = vsel %vm321_vm11, %v1023_v36, %v292_v21  ;;  %v338_v35 = vsel %vm321_vm11, %v1027_v38, %v293_v25 }
  0xd4   : > { %v339_v41 = vsel %vm324_vm13, %v337_v32, %v302_v31 }
  0xd6   : > { %v740_v47 = vpop.permute.xlu0 %739  ;;  %v755_v54 = vpop.permute.xlu1 %754 }
  0xd7   : > { %v742_v49 = vunpack.i.h.bf16 %v740_v47  ;;  %v741_v50 = vunpack.i.l.bf16 %v740_v47  ;;  %v757_v58 = vunpack.i.h.bf16 %v755_v54  ;;  %v756_v59 = vunpack.i.l.bf16 %v755_v54 }
  0xd9   : > { %v193_v55 = vsel %vm192_vm1, %v737_v45, %v741_v50  ;;  %v194_v57 = vsel %vm192_vm1, %v741_v50, %v742_v49  ;;  %v204_v60 = vsel %vm203_vm2, %v752_v51, %v756_v59  ;;  %v205_v61 = vsel %vm203_vm2, %v756_v59, %v757_v58 }
  0xda   : > { %v316_v62 = vsel %vm315_vm5, %v313_v52, %v193_v55  ;;  %v317_v63 = vsel %vm315_vm5, %v314_v53, %v194_v57 }
  0xdb   : > { %v319_v0 = vsel %vm318_vm9, %v316_v62, %v204_v60  ;;  %v320_v1 = vsel %vm318_vm9, %v317_v63, %v205_v61 }
  0xde   : > { %v765_v8 = vpop.permute.xlu0 %764 }
  0xdf   : > { %v767_v19 = vunpack.i.h.bf16 %v765_v8  ;;  %v766_v15 = vunpack.i.l.bf16 %v765_v8 }
  0xe1   : > { %v303_v17 = vsel %vm214_vm4, %v762_v13, %v766_v15 }
  0xe2   : > { %v340_v36 = vsel %vm324_vm13, %v338_v35, %v303_v17 }
 0x107   : > { %v775_v2 = vpop.permute.xlu2 %774 }
 0x108   : > { %v776_v40 = vunpack.i.l.bf16 %v775_v2  ;;  %v777_v26 = vunpack.i.h.bf16 %v775_v2 }
 0x10f   : > { %v790_v6 = vpop.permute.xlu2 %789 }
 0x110   : > { %v792_v22 = vunpack.i.h.bf16 %v790_v6  ;;  %v791_v23 = vunpack.i.l.bf16 %v790_v6 }
 0x111   : > { %v770_v3 = vpop.permute.xlu1 %769 }
 0x112   : > { %v772_v56 = vunpack.i.h.bf16 %v770_v3  ;;  %v771_v5 = vunpack.i.l.bf16 %v770_v3  ;;  %v226_v37 = vsel %vm225_vm3, %v791_v23, %v792_v22 }
 0x114   : > { %v494_v14 = vsel %vm225_vm3, %v771_v5, %v772_v56  ;;  %v495_v7 = vsel %vm225_vm3, %v772_v56, %v776_v40 }
 0x115   : > { %516 = vmatpush.msra.mxu0 %v494_v14  ;;  %536 = vmatpush.msra.mxu1 %v495_v7 }
 0x119   : > { %v785_v10 = vpop.permute.xlu1 %784 }
 0x11a   : > { %v786_v12 = vunpack.i.l.bf16 %v785_v10  ;;  %v787_v30 = vunpack.i.h.bf16 %v785_v10 }
 0x11c   : > { %v215_v29 = vsel %vm214_vm4, %v767_v19, %v786_v12  ;;  %v216_v42 = vsel %vm214_vm4, %v786_v12, %v787_v30 }
 0x11d   : > { %v322_v39 = vsel %vm321_vm11, %v319_v0, %v215_v29  ;;  %v323_v46 = vsel %vm321_vm11, %v320_v1, %v216_v42 }
 0x11e   : > { %v325_v44 = vsel %vm324_vm13, %v322_v39, %v226_v37 }
 0x125   : > { %v780_v24 = vpop.permute.xlu0 %779 }
 0x126   : > { %v782_v9 = vunpack.i.h.bf16 %v780_v24  ;;  %v781_v28 = vunpack.i.l.bf16 %v780_v24 }
 0x128   : > { %v492_v33 = vsel %vm225_vm3, %v777_v26, %v781_v28  ;;  %v493_v34 = vsel %vm225_vm3, %v781_v28, %v782_v9 }
 0x129   : > { %517 = vmatpush.msra.mxu0 %v492_v33  ;;  %537 = vmatpush.msra.mxu1 %v493_v34 }
 0x12b   : > { %518 = vmatpush.msra.mxu0 %v339_v41  ;;  %538 = vmatpush.msra.mxu1 %v340_v36 }
 0x12d   : > { %v224_v38 = vpop.permute.xlu0 %223  ;;  %519 = vmatpush.msra.mxu0 %v325_v44 }
 0x12e   : > { %v227_v45 = vsel %vm225_vm3, %v792_v22, %v224_v38  ;;  %609 = vmatmul.msk.f32.vlgmr.msra.gmra.mxu0 %vm361_vm6, %v500_v43 }
 0x12f   : > { %v326_v27 = vsel %vm324_vm13, %v323_v46, %v227_v45 }
 0x130   : > { %539 = vmatpush.msra.mxu1 %v326_v27 }
 0x131   : > { %610 = vmatmul.msk.f32.vlgmr.msra.gmra.mxu1 %vm361_vm6, %v500_v43 }
 0x1ab   : > { %v521_v47 = vpop.f32.mrf.mxu0 }
 0x1ac   : > { %544 = vst [vmem:[%s143_s7] sm:$0xff] %v521_v47 }
 0x1ae   : > { %v541_v48 = vpop.f32.mrf.mxu1 }
 0x1af   : > { %545 = vst [vmem:[%s143_s7 + $0x8] sm:$0xff] %v541_v48 }
 0x1b0 PF: > { %s12_s9 = sadd.s32 1, %s799_s9  }
 0x1b1   : > { %p9_p4 = scmp.ge.s32.totalorder %s12_s9, 4  }
 0x1b3   :  { %11 = sbr.rel (!%p9_p4) target bundleno = 1 (0x1), region = 58 }

</bundles_post_ra>
